<compile_context>
chip_gen: v6e
topology: v6e:2x2x1
jax: 0.10.0
libtpu: 0.0.40
codegen_flags: <defaults>
</compile_context>

<pallas_src>
from typing import NamedTuple

import jax
import jax.numpy as jnp
from jax.experimental import pallas as pl
from jax.experimental.pallas import tpu as pltpu


def _round_up(v, m):
    return ((v + m - 1) // m) * m


class FNNParams(NamedTuple):
    """Padded, pre-cast parameters (built once at model load)."""
    w1: jax.Array   # (in_p, h_p)   compute_dtype
    b1: jax.Array   # (1, h_p)      float32
    w2: jax.Array   # (h_p, out_p)  compute_dtype
    b2: jax.Array   # (1, out_p)    float32


def fnn_kernel(x_ref, w1_ref, b1_ref, w2_ref, b2_ref, o_ref):
    # x_ref:  (TM, IN)   w1_ref: (IN, H)   b1_ref: (1, H)
    # w2_ref: (H, OUT)   b2_ref: (1, OUT)  o_ref:  (TM, OUT)
    x = x_ref[...]
    # Matmul 1 on the MXU with f32 accumulation; bias + tanh epilogue in f32
    # (tanh goes to the EUP, a separate bundle slot).
    h = jnp.dot(x, w1_ref[...], preferred_element_type=jnp.float32) + b1_ref[...]
    h = jnp.tanh(h)
    # Match the second matmul's MXU input dtype (bf16 when compute_dtype=bf16).
    h = h.astype(w2_ref.dtype)
    y = jnp.dot(h, w2_ref[...], preferred_element_type=jnp.float32) + b2_ref[...]
    o_ref[...] = y.astype(o_ref.dtype)


def prepare_fnn_params(w1, b1, w2, b2, *, compute_dtype=jnp.bfloat16):
    """Pad weights to lane-dense (128-multiple) shapes and cast once.

    w1: (input_size, hidden_size)   -- pre-transposed vs PyTorch nn.Linear
    b1: (hidden_size,)
    w2: (hidden_size, output_size)  -- pre-transposed vs PyTorch nn.Linear
    b2: (output_size,)
    Zero padding is exact: tanh(0) = 0 flows through zero-padded W2 rows.
    """
    in_size, hidden = w1.shape
    out_size = w2.shape[1]
    in_p = _round_up(in_size, 128)
    h_p = _round_up(hidden, 128)
    out_p = _round_up(out_size, 128)

    w1_pad = jnp.zeros((in_p, h_p), compute_dtype).at[:in_size, :hidden].set(
        w1.astype(compute_dtype))
    b1_pad = jnp.zeros((1, h_p), jnp.float32).at[0, :hidden].set(
        b1.astype(jnp.float32))
    w2_pad = jnp.zeros((h_p, out_p), compute_dtype).at[:hidden, :out_size].set(
        w2.astype(compute_dtype))
    b2_pad = jnp.zeros((1, out_p), jnp.float32).at[0, :out_size].set(
        b2.astype(jnp.float32))
    return FNNParams(w1_pad, b1_pad, w2_pad, b2_pad)


def fnn_forward(x, params: FNNParams, output_size, *, block_m=512):
    """Forward pass of FNN: flatten -> Linear -> Tanh -> Linear.

    x: (N, ...) array; flattened to (N, prod(...)) like torch.flatten(x, 1).
    params: FNNParams from prepare_fnn_params (compute dtype = params.w1.dtype).
    output_size: true (unpadded) output feature count (static int).
    """
    n = x.shape[0]
    x2 = x.reshape(n, -1)
    in_size = x2.shape[1]

    compute_dtype = params.w1.dtype
    itemsize = jnp.dtype(compute_dtype).itemsize
    in_p, h_p = params.w1.shape
    out_p = params.w2.shape[1]
    assert in_p == _round_up(in_size, 128), "params prepared for a different input_size"

    # --- x feed: at most one fused pass (cast and/or lane pad), no batch pad.
    if x2.dtype != compute_dtype:
        x2 = x2.astype(compute_dtype)
    if in_size != in_p:
        x_in = jnp.pad(x2, ((0, 0), (0, in_p - in_size)))
    else:
        x_in = x2

    # --- batch tiling: dtype-aware sublane rounding; large batches use big
    # tiles (amortize ~0.35 us/step) but keep >= 2 tiles for v7x megacore.
    sub = max(8, 32 // itemsize)          # 8 rows (f32), 16 rows (bf16)
    if n <= 2 * sub:
        tm = _round_up(n, sub)
    else:
        tm = min(_round_up(block_m, sub), _round_up(pl.cdiv(n, 2), sub))
    grid_m = pl.cdiv(n, tm)               # last tile may be partial (masked)

    # --- explicit VMEM budget (double-buffered x/out + resident weights),
    # clamped to v7x's 64 MiB physical VMEM.
    vmem_bytes = (2 * tm * in_p * itemsize          # x (double-buffered)
                  + 2 * tm * out_p * 4              # out (double-buffered)
                  + 2 * in_p * h_p * itemsize       # W1 (resident)
                  + 2 * h_p * out_p * itemsize      # W2 (resident)
                  + 2 * (h_p + out_p) * 4)          # biases
    vmem_limit = min(max(int(vmem_bytes * 1.5) + (2 << 20), 32 << 20), 64 << 20)

    cost = pl.CostEstimate(
        flops=2 * n * (in_p * h_p + h_p * out_p),
        transcendentals=n * h_p,
        bytes_accessed=(n * in_p * itemsize          # x
                        + in_p * h_p * itemsize      # W1
                        + h_p * out_p * itemsize     # W2
                        + (h_p + out_p) * 4          # biases
                        + n * out_p * 4),            # output
    )

    out = pl.pallas_call(
        fnn_kernel,
        out_shape=jax.ShapeDtypeStruct((n, out_p), jnp.float32),
        grid=(grid_m,),
        in_specs=[
            pl.BlockSpec((tm, in_p), lambda i: (i, 0)),       # x: streamed per tile
            pl.BlockSpec((in_p, h_p), lambda i: (0, 0)),      # W1: resident
            pl.BlockSpec((1, h_p), lambda i: (0, 0)),         # b1: resident
            pl.BlockSpec((h_p, out_p), lambda i: (0, 0)),     # W2: resident
            pl.BlockSpec((1, out_p), lambda i: (0, 0)),       # b2: resident
        ],
        out_specs=pl.BlockSpec((tm, out_p), lambda i: (i, 0)),
        compiler_params=pltpu.CompilerParams(
            # Batch tiles are independent -> megacore-shardable on v7x.
            dimension_semantics=("parallel",),
            vmem_limit_bytes=vmem_limit,
        ),
        cost_estimate=cost,
    )(x_in, params.w1, params.b1, params.w2, params.b2)

    return out[:, :output_size] if output_size != out_p else out


def init_fnn_params(key, input_size, hidden_size, output_size):
    """Deterministic init mirroring nn.Linear's uniform(-1/sqrt(fan_in), 1/sqrt(fan_in)).
    Weights are stored as (in_features, out_features) (transposed vs PyTorch)."""
    k1, k2, k3, k4 = jax.random.split(key, 4)
    bound1 = 1.0 / jnp.sqrt(input_size)
    bound2 = 1.0 / jnp.sqrt(hidden_size)
    w1 = jax.random.uniform(k1, (input_size, hidden_size), jnp.float32,
                            minval=-bound1, maxval=bound1)
    b1 = jax.random.uniform(k2, (hidden_size,), jnp.float32,
                            minval=-bound1, maxval=bound1)
    w2 = jax.random.uniform(k3, (hidden_size, output_size), jnp.float32,
                            minval=-bound2, maxval=bound2)
    b2 = jax.random.uniform(k4, (output_size,), jnp.float32,
                            minval=-bound2, maxval=bound2)
    return w1, b1, w2, b2


def fnn_reference(x, w1, b1, w2, b2):
    """Pure-JAX reference of the PyTorch forward."""
    n = x.shape[0]
    x2 = x.reshape(n, -1).astype(jnp.float32)
    h = jnp.tanh(x2 @ w1 + b1)
    return h @ w2 + b2


if __name__ == "__main__":
    # Small shapes consistent with the module: x (2, 4, 16, 16) flattened to
    # input_size = 4*16*16 = 1024, hidden_size = 32, output_size = 8.
    batch, C, H, W = 2, 4, 16, 16
    input_size = C * H * W
    hidden_size = 32
    output_size = 8

    key = jax.random.PRNGKey(0)
    kx, kp = jax.random.split(key)
    x = jax.random.normal(kx, (batch, C, H, W), jnp.float32)
    w1, b1, w2, b2 = init_fnn_params(kp, input_size, hidden_size, output_size)

    ref = fnn_reference(x, w1, b1, w2, b2)
    fwd = jax.jit(fnn_forward, static_argnums=(2,))

    # Exact-precision path (f32 MXU inputs) -- tight tolerance vs reference.
    params_f32 = prepare_fnn_params(w1, b1, w2, b2, compute_dtype=jnp.float32)
    out_f32 = jax.block_until_ready(fwd(x, params_f32, output_size))
    assert out_f32.shape == (batch, output_size)
    assert jnp.allclose(out_f32, ref, atol=1e-4, rtol=1e-4), "f32 mismatch vs reference"

    # Default fast path (bf16 MXU inputs, f32 accumulation/epilogue).
    params_bf16 = prepare_fnn_params(w1, b1, w2, b2)
    out_bf16 = jax.block_until_ready(fwd(x, params_bf16, output_size))
    assert out_bf16.shape == (batch, output_size)
    assert jnp.allclose(out_bf16, ref, atol=5e-2, rtol=5e-2), "bf16 mismatch vs reference"

    print("KERNEL_OK")
</pallas_src>

<mosaic_0001>
module attributes {stable_mosaic.version = 11 : i64} {
  func.func @fnn_kernel(%arg0: i32, %arg1: memref<8x1024xf32, #tpu.memory_space<vmem>>, %arg2: memref<1024x128xf32, #tpu.memory_space<vmem>>, %arg3: memref<1x128xf32, #tpu.memory_space<vmem>>, %arg4: memref<128x128xf32, #tpu.memory_space<vmem>>, %arg5: memref<1x128xf32, #tpu.memory_space<vmem>>, %arg6: memref<8x128xf32, #tpu.memory_space<vmem>>) attributes {dimension_semantics = [#tpu.dimension_semantics<parallel>], iteration_bounds = array<i64: 1>, scalar_prefetch = 0 : i64, scratch_operands = 0 : i64, tpu.core_type = #tpu.core_type<tc>, window_params = [{transform_indices = @transform_0, window_bounds = array<i64: 8, 1024>}, {pipeline_mode = #tpu.pipeline_mode<synchronous>, transform_indices = @transform_1, window_bounds = array<i64: 1024, 128>}, {pipeline_mode = #tpu.pipeline_mode<synchronous>, transform_indices = @transform_2, window_bounds = array<i64: 1, 128>}, {pipeline_mode = #tpu.pipeline_mode<synchronous>, transform_indices = @transform_3, window_bounds = array<i64: 128, 128>}, {pipeline_mode = #tpu.pipeline_mode<synchronous>, transform_indices = @transform_4, window_bounds = array<i64: 1, 128>}, {transform_indices = @transform_5, window_bounds = array<i64: 8, 128>}]} {
    %c0 = arith.constant 0 : index
    %c0_0 = arith.constant 0 : index
    %0 = vector.load %arg1[%c0, %c0_0] : memref<8x1024xf32, #tpu.memory_space<vmem>>, vector<8x1024xf32>
    %c0_1 = arith.constant 0 : index
    %c0_2 = arith.constant 0 : index
    %1 = vector.load %arg2[%c0_1, %c0_2] : memref<1024x128xf32, #tpu.memory_space<vmem>>, vector<1024x128xf32>
    %cst = arith.constant dense<0.000000e+00> : vector<8x128xf32>
    %2 = tpu.matmul %0, %1, %cst {dimension_numbers = #tpu.dot_dimension_numbers<[1], [0], [0], [1], [0, 0, 1, 1], [], []>} : vector<8x1024xf32>, vector<1024x128xf32>, vector<8x128xf32> -> vector<8x128xf32>
    %c0_3 = arith.constant 0 : index
    %c0_4 = arith.constant 0 : index
    %3 = vector.load %arg3[%c0_3, %c0_4] : memref<1x128xf32, #tpu.memory_space<vmem>>, vector<1x128xf32>
    %4 = vector.broadcast %3 : vector<1x128xf32> to vector<8x128xf32>
    %5 = arith.addf %2, %4 : vector<8x128xf32>
    %6 = math.tanh %5 : vector<8x128xf32>
    %c0_5 = arith.constant 0 : index
    %c0_6 = arith.constant 0 : index
    %7 = vector.load %arg4[%c0_5, %c0_6] : memref<128x128xf32, #tpu.memory_space<vmem>>, vector<128x128xf32>
    %cst_7 = arith.constant dense<0.000000e+00> : vector<8x128xf32>
    %8 = tpu.matmul %6, %7, %cst_7 {dimension_numbers = #tpu.dot_dimension_numbers<[1], [0], [0], [1], [0, 0, 1, 1], [], []>} : vector<8x128xf32>, vector<128x128xf32>, vector<8x128xf32> -> vector<8x128xf32>
    %c0_8 = arith.constant 0 : index
    %c0_9 = arith.constant 0 : index
    %9 = vector.load %arg5[%c0_8, %c0_9] : memref<1x128xf32, #tpu.memory_space<vmem>>, vector<1x128xf32>
    %10 = vector.broadcast %9 : vector<1x128xf32> to vector<8x128xf32>
    %11 = arith.addf %8, %10 : vector<8x128xf32>
    %c0_10 = arith.constant 0 : index
    %c0_11 = arith.constant 0 : index
    %12 = vector.load %arg6[%c0_10, %c0_11] : memref<8x128xf32, #tpu.memory_space<vmem>>, vector<8x128xf32>
    tpu.vector_store %arg6[%c0_10, %c0_11], %11 {strides = array<i32>} : memref<8x128xf32, #tpu.memory_space<vmem>>, vector<8x128xf32>,
    return
  }
  func.func @transform_0(%arg0: i32) -> (i32, i32) {
    %c0_i32 = arith.constant 0 : i32
    %c0_i32_0 = arith.constant 0 : i32
    return %arg0, %c0_i32 : i32, i32
  }
  func.func @transform_1(%arg0: i32) -> (i32, i32) {
    %c0_i32 = arith.constant 0 : i32
    %c0_i32_0 = arith.constant 0 : i32
    %c0_i32_1 = arith.constant 0 : i32
    return %c0_i32, %c0_i32_0 : i32, i32
  }
  func.func @transform_2(%arg0: i32) -> (i32, i32) {
    %c0_i32 = arith.constant 0 : i32
    %c0_i32_0 = arith.constant 0 : i32
    %c0_i32_1 = arith.constant 0 : i32
    return %c0_i32, %c0_i32_0 : i32, i32
  }
  func.func @transform_3(%arg0: i32) -> (i32, i32) {
    %c0_i32 = arith.constant 0 : i32
    %c0_i32_0 = arith.constant 0 : i32
    %c0_i32_1 = arith.constant 0 : i32
    return %c0_i32, %c0_i32_0 : i32, i32
  }
  func.func @transform_4(%arg0: i32) -> (i32, i32) {
    %c0_i32 = arith.constant 0 : i32
    %c0_i32_0 = arith.constant 0 : i32
    %c0_i32_1 = arith.constant 0 : i32
    return %c0_i32, %c0_i32_0 : i32, i32
  }
  func.func @transform_5(%arg0: i32) -> (i32, i32) {
    %c0_i32 = arith.constant 0 : i32
    %c0_i32_0 = arith.constant 0 : i32
    return %arg0, %c0_i32 : i32, i32
  }
}

</mosaic_0001>

<bundles_post_ra>
// kernel: fnn_forward.1
= control target key start
LH: loop header
LB: loop body
LE: loop exit
PB: predicated region body
PF: predicated region fallthrough
CT: control target
= control target key end

     0   :  { %10 = vsyncpa [#allocation3], 0  ;;  %s1052_s0 = inlined_call_operand.vmem [shape: f32[2,1024], index: 0, kind: input, shape index: {}]   ;;  %s1053_s1 = inlined_call_operand.hbm [shape: f32[1024,128], index: 1, kind: input, shape index: {}]   ;;  %s1054_s2 = inlined_call_operand.vmem [shape: f32[1,128], index: 2, kind: input, shape index: {}]   ;;  %s1055_s3 = inlined_call_operand.vmem [shape: f32[128,128], index: 3, kind: input, shape index: {}]   ;;  %s1056_s4 = inlined_call_operand.vmem [shape: f32[1,128], index: 4, kind: input, shape index: {}]   ;;  %s1057_s5 = inlined_call_operand.hbm [shape: f32[2,128], index: 5, kind: output, shape index: {}]  }
   0x1   :  { %11 = vsyncpa [#allocation4], 0  ;;  %s919_s18 = smov [#allocation2]  }
   0x2   :  { %s19_s19 = sshll.u32 %s919_s18, 4  ;;  %s20_s19 = int_to_ptr.vmem [resolvable:$true] %s19_s19 }
   0x3   :  { %s883_s20 = scalar_lea.vmem %s20_s19, 16384  ;;  %p888_p1 = scmp.lt.s32.totalorder %s20_s19, %s20_s19 }
   0x4   :  { %p884_p0 = scmp.ne.s32.totalorder %s20_s19, %s883_s20  ;;  %p889_p2 = scmp.lt.s32.totalorder %s883_s20, %s883_s20 }
   0x6   :  { %p890_p3 = por %p889_p2, %p888_p1 }
   0x8   :  { %p891_p4 = pnand %p890_p3, %p884_p0 }
   0xa   :  { %894 = shalt.err (!%p891_p4)
}
   0xb   :  { %s920_s21 = smov 128   ;;  %s921_s22 = smov 8  }
   0xc   :  { %25 = dma.hbm_to_vmem [thread:$0]  %s1053_s1, 16384, %s20_s19, [#allocation3], %s920_s21, %s920_s21, %s921_s22  }
   0xd   :  { %915 = dma.done.wait [#allocation3], 16384  }
   0xe   :  { %916 = vsyncadd [#allocation3], 4294950912  ;;  %v74_v0 = vld [vmem:[#allocation2 + $0xf8] sm:$0xff]  ;;  %v73_v4 = vld [vmem:[#allocation2 + $0xf0] sm:$0xff]  ;;  %v922_v30 = vmov 1983009808   ;;  %v193_v32 = vlaneseq }
   0xf   :  { %v106_v1 = vld [vmem:[#allocation2 + $0x1f8] sm:$0xff]  ;;  %660 = vmatprep.subr.mxu0 %v74_v0  ;;  %v105_v5 = vld [vmem:[#allocation2 + $0x1f0] sm:$0xff]  ;;  %v72_v8 = vld [vmem:[#allocation2 + $0xe8] sm:$0xff]  ;;  %v191_v31 = vunpack.c.l.s4 %v922_v30  ;;  %vm924_vm0 = vmmov 0  }
  0x10   :  { %v58_v2 = vld [vmem:[#allocation2 + $0x78] sm:$0xff]  ;;  %695 = vmatprep.subr.mxu1 %v106_v1  ;;  %v57_v6 = vld [vmem:[#allocation2 + $0x70] sm:$0xff]  ;;  %v104_v9 = vld [vmem:[#allocation2 + $0x1e8] sm:$0xff]  ;;  %v194_v42 = vshrl.u32 %v193_v32, 7 }
  0x11   :  { %v90_v3 = vld [vmem:[#allocation2 + $0x178] sm:$0xff]  ;;  %661 = vmatpush3.msra.mxu0 %v58_v2  ;;  %v89_v7 = vld [vmem:[#allocation2 + $0x170] sm:$0xff]  ;;  %v56_v10 = vld [vmem:[#allocation2 + $0x68] sm:$0xff]  ;;  %v192_v41 = vunpack.c.0.s8 %v191_v31 }
  0x12   :  { %696 = vmatpush3.msra.mxu1 %v90_v3  ;;  %662 = vmatprep.subr.mxu0 %v73_v4  ;;  %v88_v11 = vld [vmem:[#allocation2 + $0x168] sm:$0xff]  ;;  %v71_v12 = vld [vmem:[#allocation2 + $0xe0] sm:$0xff]  ;;  %v70_v16 = vld [vmem:[#allocation2 + $0xd8] sm:$0xff] }
  0x13   :  { %697 = vmatprep.subr.mxu1 %v105_v5  ;;  %663 = vmatpush3.msra.mxu0 %v57_v6  ;;  %v103_v13 = vld [vmem:[#allocation2 + $0x1e0] sm:$0xff]  ;;  %v102_v17 = vld [vmem:[#allocation2 + $0x1d8] sm:$0xff]  ;;  %v69_v20 = vld [vmem:[#allocation2 + $0xd0] sm:$0xff]  ;;  %v961_v55 = vsub.s32 %v192_v41, %v194_v42 }
  0x14   :  { %698 = vmatpush3.msra.mxu1 %v89_v7  ;;  %664 = vmatprep.subr.mxu0 %v72_v8  ;;  %v55_v14 = vld [vmem:[#allocation2 + $0x60] sm:$0xff]  ;;  %v54_v18 = vld [vmem:[#allocation2 + $0x58] sm:$0xff]  ;;  %v101_v21 = vld [vmem:[#allocation2 + $0x1d0] sm:$0xff] }
  0x15   :  { %699 = vmatprep.subr.mxu1 %v104_v9  ;;  %v87_v15 = vld [vmem:[#allocation2 + $0x160] sm:$0xff]  ;;  %665 = vmatpush3.msra.mxu0 %v56_v10  ;;  %v86_v19 = vld [vmem:[#allocation2 + $0x158] sm:$0xff]  ;;  %v53_v22 = vld [vmem:[#allocation2 + $0x50] sm:$0xff] }
  0x16   :  { %700 = vmatpush3.msra.mxu1 %v88_v11  ;;  %666 = vmatprep.subr.mxu0 %v71_v12  ;;  %v85_v23 = vld [vmem:[#allocation2 + $0x150] sm:$0xff]  ;;  %v68_v24 = vld [vmem:[#allocation2 + $0xc8] sm:$0xff]  ;;  %v67_v28 = vld [vmem:[#allocation2 + $0xc0] sm:$0xff] }
  0x17   :  { %701 = vmatprep.subr.mxu1 %v103_v13  ;;  %667 = vmatpush3.msra.mxu0 %v55_v14  ;;  %v100_v25 = vld [vmem:[#allocation2 + $0x1c8] sm:$0xff]  ;;  %v99_v29 = vld [vmem:[#allocation2 + $0x1c0] sm:$0xff]  ;;  %v66_v35 = vld [vmem:[#allocation2 + $0xb8] sm:$0xff] }
  0x18   :  { %702 = vmatpush3.msra.mxu1 %v87_v15  ;;  %668 = vmatprep.subr.mxu0 %v70_v16  ;;  %v52_v26 = vld [vmem:[#allocation2 + $0x48] sm:$0xff]  ;;  %v51_v33 = vld [vmem:[#allocation2 + $0x40] sm:$0xff]  ;;  %v98_v36 = vld [vmem:[#allocation2 + $0x1b8] sm:$0xff] }
  0x19   :  { %703 = vmatprep.subr.mxu1 %v102_v17  ;;  %669 = vmatpush3.msra.mxu0 %v54_v18  ;;  %v84_v27 = vld [vmem:[#allocation2 + $0x148] sm:$0xff]  ;;  %v83_v34 = vld [vmem:[#allocation2 + $0x140] sm:$0xff]  ;;  %v50_v37 = vld [vmem:[#allocation2 + $0x38] sm:$0xff] }
  0x1a   :  { %704 = vmatpush3.msra.mxu1 %v86_v19  ;;  %670 = vmatprep.subr.mxu0 %v69_v20  ;;  %v82_v38 = vld [vmem:[#allocation2 + $0x138] sm:$0xff]  ;;  %v65_v39 = vld [vmem:[#allocation2 + $0xb0] sm:$0xff]  ;;  %v64_v45 = vld [vmem:[#allocation2 + $0xa8] sm:$0xff] }
  0x1b   :  { %705 = vmatprep.subr.mxu1 %v101_v21  ;;  %671 = vmatpush3.msra.mxu0 %v53_v22  ;;  %v97_v40 = vld [vmem:[#allocation2 + $0x1b0] sm:$0xff]  ;;  %v96_v46 = vld [vmem:[#allocation2 + $0x1a8] sm:$0xff]  ;;  %v63_v49 = vld [vmem:[#allocation2 + $0xa0] sm:$0xff] }
  0x1c   :  { %706 = vmatpush3.msra.mxu1 %v85_v23  ;;  %672 = vmatprep.subr.mxu0 %v68_v24  ;;  %v49_v43 = vld [vmem:[#allocation2 + $0x30] sm:$0xff]  ;;  %v48_v47 = vld [vmem:[#allocation2 + $0x28] sm:$0xff]  ;;  %v95_v50 = vld [vmem:[#allocation2 + $0x1a0] sm:$0xff] }
  0x1d   :  { %707 = vmatprep.subr.mxu1 %v100_v25  ;;  %673 = vmatpush3.msra.mxu0 %v52_v26  ;;  %v81_v44 = vld [vmem:[#allocation2 + $0x130] sm:$0xff]  ;;  %v80_v48 = vld [vmem:[#allocation2 + $0x128] sm:$0xff]  ;;  %v47_v51 = vld [vmem:[#allocation2 + $0x20] sm:$0xff] }
  0x1e   :  { %708 = vmatpush3.msra.mxu1 %v84_v27  ;;  %674 = vmatprep.subr.mxu0 %v67_v28  ;;  %v79_v52 = vld [vmem:[#allocation2 + $0x120] sm:$0xff]  ;;  %v62_v53 = vld [vmem:[#allocation2 + $0x98] sm:$0xff]  ;;  %v61_v62 = vld [vmem:[#allocation2 + $0x90] sm:$0xff] }
  0x1f   :  { %709 = vmatprep.subr.mxu1 %v99_v29  ;;  %675 = vmatpush3.msra.mxu0 %v51_v33  ;;  %v94_v54 = vld [vmem:[#allocation2 + $0x198] sm:$0xff]  ;;  %v861_v57 = vld [vmem:[%s1052_s0] ss:$16 sps:$4 sm:$0xff]   ;;  %v865_v60 = vld [vmem:[%s1052_s0 + $0x4] ss:$16 sps:$4 sm:$0xff]  }
  0x20   :  { %710 = vmatpush3.msra.mxu1 %v83_v34  ;;  %676 = vmatprep.subr.mxu0 %v66_v35  ;;  %v46_v56 = vld [vmem:[#allocation2 + $0x18] sm:$0xff]  ;;  %v863_v58 = vld [vmem:[%s1052_s0 + $0x20] ss:$16 sps:$4 sm:$0xff]   ;;  %v866_v61 = vld [vmem:[%s1052_s0 + $0x24] ss:$16 sps:$4 sm:$0xff]   ;;  %v196_v0 = vrot.slane %v861_v57, %v961_v55  ;;  %v203_v6 = vrot.slane %v865_v60, %v961_v55 }
  0x21   :  { %711 = vmatprep.subr.mxu1 %v98_v36  ;;  %677 = vmatpush3.msra.mxu0 %v50_v37  ;;  %v78_v59 = vld [vmem:[#allocation2 + $0x118] sm:$0xff]  ;;  %v93_v63 = vld [vmem:[#allocation2 + $0x190] sm:$0xff]  ;;  %v210_v1 = vrot.slane %v863_v58, %v961_v55  ;;  %v60_v4 = vld [vmem:[#allocation2 + $0x88] sm:$0xff]  ;;  %v217_v7 = vrot.slane %v866_v61, %v961_v55 }
  0x22   :  { %712 = vmatpush3.msra.mxu1 %v82_v38  ;;  %678 = vmatprep.subr.mxu0 %v65_v39  ;;  %v45_v2 = vld [vmem:[#allocation2 + $0x10] sm:$0xff]  ;;  %v92_v5 = vld [vmem:[#allocation2 + $0x188] sm:$0xff]  ;;  %v59_v10 = vld [vmem:[#allocation2 + $0x80] sm:$0xff] }
  0x23   :  { %713 = vmatprep.subr.mxu1 %v97_v40  ;;  %679 = vmatpush3.msra.mxu0 %v49_v43  ;;  %v77_v3 = vld [vmem:[#allocation2 + $0x110] sm:$0xff]  ;;  %v44_v8 = vld [vmem:[#allocation2 + $0x8] sm:$0xff]  ;;  %v91_v11 = vld [vmem:[#allocation2 + $0x180] sm:$0xff]  ;;  %v219_v12 = vcombine.high %v196_v0, %v210_v1  ;;  %v218_v14 = vcombine.low %v196_v0, %v210_v1  ;;  %v221_v16 = vcombine.high %v203_v6, %v217_v7 }
  0x24   :  { %714 = vmatpush3.msra.mxu1 %v81_v44  ;;  %680 = vmatprep.subr.mxu0 %v64_v45  ;;  %v76_v9 = vld [vmem:[#allocation2 + $0x108] sm:$0xff]  ;;  %v43_v13 = vld [vmem:[#allocation2] sm:$0xff]  ;;  %v138_v17 = vld [vmem:[#allocation2 + $0x2f8] sm:$0xff]  ;;  %v220_v18 = vcombine.low %v203_v6, %v217_v7 }
  0x25   :  { %715 = vmatprep.subr.mxu1 %v96_v46  ;;  %681 = vmatpush3.msra.mxu0 %v48_v47  ;;  %v75_v15 = vld [vmem:[#allocation2 + $0x100] sm:$0xff]  ;;  %v170_v19 = vld [vmem:[#allocation2 + $0x3f8] sm:$0xff]  ;;  %v137_v22 = vld [vmem:[#allocation2 + $0x2f0] sm:$0xff] }
  0x26   :  { %716 = vmatpush3.msra.mxu1 %v80_v48  ;;  %682 = vmatprep.subr.mxu0 %v63_v49  ;;  %v122_v20 = vld [vmem:[#allocation2 + $0x278] sm:$0xff]  ;;  %v169_v23 = vld [vmem:[#allocation2 + $0x3f0] sm:$0xff]  ;;  %v136_v26 = vld [vmem:[#allocation2 + $0x2e8] sm:$0xff] }
  0x27   :  { %717 = vmatprep.subr.mxu1 %v95_v50  ;;  %683 = vmatpush3.msra.mxu0 %v47_v51  ;;  %v154_v21 = vld [vmem:[#allocation2 + $0x378] sm:$0xff]  ;;  %v121_v24 = vld [vmem:[#allocation2 + $0x270] sm:$0xff]  ;;  %v168_v27 = vld [vmem:[#allocation2 + $0x3e8] sm:$0xff] }
  0x28   :  { %718 = vmatpush3.msra.mxu1 %v79_v52  ;;  %684 = vmatprep.subr.mxu0 %v62_v53  ;;  %v153_v25 = vld [vmem:[#allocation2 + $0x370] sm:$0xff]  ;;  %v120_v28 = vld [vmem:[#allocation2 + $0x268] sm:$0xff]  ;;  %v135_v30 = vld [vmem:[#allocation2 + $0x2e0] sm:$0xff] }
  0x29   :  { %719 = vmatprep.subr.mxu1 %v94_v54  ;;  %685 = vmatpush3.msra.mxu0 %v46_v56  ;;  %v152_v29 = vld [vmem:[#allocation2 + $0x368] sm:$0xff]  ;;  %v167_v31 = vld [vmem:[#allocation2 + $0x3e0] sm:$0xff]  ;;  %v134_v34 = vld [vmem:[#allocation2 + $0x2d8] sm:$0xff] }
  0x2a   :  { %720 = vmatpush3.msra.mxu1 %v78_v59  ;;  %686 = vmatprep.subr.mxu0 %v61_v62  ;;  %v119_v32 = vld [vmem:[#allocation2 + $0x260] sm:$0xff]  ;;  %v166_v35 = vld [vmem:[#allocation2 + $0x3d8] sm:$0xff]  ;;  %v133_v38 = vld [vmem:[#allocation2 + $0x2d0] sm:$0xff] }
  0x2b   :  { %721 = vmatprep.subr.mxu1 %v93_v63  ;;  %687 = vmatpush3.msra.mxu0 %v45_v2  ;;  %v151_v33 = vld [vmem:[#allocation2 + $0x360] sm:$0xff]  ;;  %v118_v36 = vld [vmem:[#allocation2 + $0x258] sm:$0xff]  ;;  %v165_v39 = vld [vmem:[#allocation2 + $0x3d0] sm:$0xff] }
  0x2c   :  { %722 = vmatpush3.msra.mxu1 %v77_v3  ;;  %688 = vmatprep.subr.mxu0 %v60_v4  ;;  %v150_v37 = vld [vmem:[#allocation2 + $0x358] sm:$0xff]  ;;  %v117_v40 = vld [vmem:[#allocation2 + $0x250] sm:$0xff]  ;;  %v132_v42 = vld [vmem:[#allocation2 + $0x2c8] sm:$0xff] }
  0x2d   :  { %723 = vmatprep.subr.mxu1 %v92_v5  ;;  %689 = vmatpush3.msra.mxu0 %v44_v8  ;;  %v149_v41 = vld [vmem:[#allocation2 + $0x350] sm:$0xff]  ;;  %v164_v43 = vld [vmem:[#allocation2 + $0x3c8] sm:$0xff]  ;;  %v131_v46 = vld [vmem:[#allocation2 + $0x2c0] sm:$0xff] }
  0x2e   :  { %724 = vmatpush3.msra.mxu1 %v76_v9  ;;  %690 = vmatprep.subr.mxu0 %v59_v10  ;;  %v116_v44 = vld [vmem:[#allocation2 + $0x248] sm:$0xff]  ;;  %v163_v47 = vld [vmem:[#allocation2 + $0x3c0] sm:$0xff]  ;;  %v130_v50 = vld [vmem:[#allocation2 + $0x2b8] sm:$0xff] }
  0x2f   :  { %725 = vmatprep.subr.mxu1 %v91_v11  ;;  %691 = vmatpush3.msra.mxu0 %v43_v13  ;;  %v148_v45 = vld [vmem:[#allocation2 + $0x348] sm:$0xff]  ;;  %v115_v48 = vld [vmem:[#allocation2 + $0x240] sm:$0xff]  ;;  %v162_v51 = vld [vmem:[#allocation2 + $0x3b8] sm:$0xff] }
  0x30   :  { %330 = vmatprep.mubr.f32.mxu0 %v219_v12  ;;  %726 = vmatpush3.msra.mxu1 %v75_v15  ;;  %v147_v49 = vld [vmem:[#allocation2 + $0x340] sm:$0xff]  ;;  %v114_v52 = vld [vmem:[#allocation2 + $0x238] sm:$0xff]  ;;  %v129_v54 = vld [vmem:[#allocation2 + $0x2b0] sm:$0xff] }
  0x31   :  { %331 = vmatmul.mubr.f32.vlgmr.msra.gmra.mxu0 %v218_v14  ;;  %400 = vmatprep.mubr.f32.mxu1 %v221_v16  ;;  %v146_v53 = vld [vmem:[#allocation2 + $0x338] sm:$0xff]  ;;  %v161_v56 = vld [vmem:[#allocation2 + $0x3b0] sm:$0xff]  ;;  %v128_v59 = vld [vmem:[#allocation2 + $0x2a8] sm:$0xff] }
  0x32   :  { %730 = vmatprep.subr.mxu0 %v138_v17  ;;  %765 = vmatprep.subr.mxu1 %v170_v19  ;;  %v113_v57 = vld [vmem:[#allocation2 + $0x230] sm:$0xff]  ;;  %v160_v60 = vld [vmem:[#allocation2 + $0x3a8] sm:$0xff]  ;;  %v127_v63 = vld [vmem:[#allocation2 + $0x2a0] sm:$0xff] }
  0x33   :  { %401 = vmatmul.mubr.f32.vlgmr.msra.gmra.mxu1 %v220_v18  ;;  %731 = vmatpush3.msra.mxu0 %v122_v20  ;;  %v145_v58 = vld [vmem:[#allocation2 + $0x330] sm:$0xff]  ;;  %v112_v61 = vld [vmem:[#allocation2 + $0x228] sm:$0xff]  ;;  %v159_v0 = vld [vmem:[#allocation2 + $0x3a0] sm:$0xff] }
  0x34   :  { %766 = vmatpush3.msra.mxu1 %v154_v21  ;;  %732 = vmatprep.subr.mxu0 %v137_v22  ;;  %v144_v62 = vld [vmem:[#allocation2 + $0x328] sm:$0xff]  ;;  %v111_v1 = vld [vmem:[#allocation2 + $0x220] sm:$0xff]  ;;  %v126_v7 = vld [vmem:[#allocation2 + $0x298] sm:$0xff] }
  0x35   :  { %767 = vmatprep.subr.mxu1 %v169_v23  ;;  %733 = vmatpush3.msra.mxu0 %v121_v24  ;;  %v867_v2 = vld [vmem:[%s1052_s0 + $0x8] ss:$16 sps:$4 sm:$0xff]   ;;  %v143_v4 = vld [vmem:[#allocation2 + $0x320] sm:$0xff]  ;;  %v871_v5 = vld [vmem:[%s1052_s0 + $0xc] ss:$16 sps:$4 sm:$0xff]  }
  0x36   :  { %768 = vmatpush3.msra.mxu1 %v153_v25  ;;  %734 = vmatprep.subr.mxu0 %v136_v26  ;;  %v869_v3 = vld [vmem:[%s1052_s0 + $0x28] ss:$16 sps:$4 sm:$0xff]   ;;  %v872_v6 = vld [vmem:[%s1052_s0 + $0x2c] ss:$16 sps:$4 sm:$0xff]   ;;  %v125_v11 = vld [vmem:[#allocation2 + $0x290] sm:$0xff]  ;;  %v232_v13 = vrot.slane %v867_v2, %v961_v55  ;;  %v239_v17 = vrot.slane %v871_v5, %v961_v55 }
  0x37   :  { %769 = vmatprep.subr.mxu1 %v168_v27  ;;  %735 = vmatpush3.msra.mxu0 %v120_v28  ;;  %v158_v8 = vld [vmem:[#allocation2 + $0x398] sm:$0xff]  ;;  %v157_v12 = vld [vmem:[#allocation2 + $0x390] sm:$0xff]  ;;  %v246_v14 = vrot.slane %v869_v3, %v961_v55  ;;  %v253_v18 = vrot.slane %v872_v6, %v961_v55  ;;  %v124_v19 = vld [vmem:[#allocation2 + $0x288] sm:$0xff] }
  0x38   :  { %770 = vmatpush3.msra.mxu1 %v152_v29  ;;  %736 = vmatprep.subr.mxu0 %v135_v30  ;;  %v110_v9 = vld [vmem:[#allocation2 + $0x218] sm:$0xff]  ;;  %v109_v15 = vld [vmem:[#allocation2 + $0x210] sm:$0xff]  ;;  %v156_v20 = vld [vmem:[#allocation2 + $0x388] sm:$0xff] }
  0x39   :  { %771 = vmatprep.subr.mxu1 %v167_v31  ;;  %737 = vmatpush3.msra.mxu0 %v119_v32  ;;  %v142_v10 = vld [vmem:[#allocation2 + $0x318] sm:$0xff]  ;;  %v141_v16 = vld [vmem:[#allocation2 + $0x310] sm:$0xff]  ;;  %v108_v21 = vld [vmem:[#allocation2 + $0x208] sm:$0xff]  ;;  %v255_v25 = vcombine.high %v232_v13, %v246_v14  ;;  %v257_v27 = vcombine.high %v239_v17, %v253_v18  ;;  %v254_v28 = vcombine.low %v232_v13, %v246_v14  ;;  %v923_v31 = vmov 0.0  }
  0x3a   :  { %772 = vmatpush3.msra.mxu1 %v151_v33  ;;  %738 = vmatprep.subr.mxu0 %v134_v34  ;;  %v140_v22 = vld [vmem:[#allocation2 + $0x308] sm:$0xff]  ;;  %v123_v23 = vld [vmem:[#allocation2 + $0x280] sm:$0xff]  ;;  %v256_v29 = vcombine.low %v239_v17, %v253_v18  ;;  %v562_v30 = vld [vmem:[%s1055_s3 + $0x78] sm:$0xff] }
  0x3b   :  { %773 = vmatprep.subr.mxu1 %v166_v35  ;;  %739 = vmatpush3.msra.mxu0 %v118_v36  ;;  %v155_v24 = vld [vmem:[#allocation2 + $0x380] sm:$0xff]  ;;  %v561_v32 = vld [vmem:[%s1055_s3 + $0x70] sm:$0xff]  ;;  %v560_v33 = vld [vmem:[%s1055_s3 + $0x68] sm:$0xff] }
  0x3c   :  { %774 = vmatpush3.msra.mxu1 %v150_v37  ;;  %740 = vmatprep.subr.mxu0 %v133_v38  ;;  %v107_v26 = vld [vmem:[#allocation2 + $0x200] sm:$0xff]  ;;  %v558_v35 = vld [vmem:[%s1055_s3 + $0x58] sm:$0xff]  ;;  %v557_v36 = vld [vmem:[%s1055_s3 + $0x50] sm:$0xff] }
  0x3d   :  { %775 = vmatprep.subr.mxu1 %v165_v39  ;;  %741 = vmatpush3.msra.mxu0 %v117_v40  ;;  %v139_v55 = vld [vmem:[#allocation2 + $0x300] sm:$0xff]  ;;  %v556_v37 = vld [vmem:[%s1055_s3 + $0x48] sm:$0xff]  ;;  %v554_v39 = vld [vmem:[%s1055_s3 + $0x38] sm:$0xff] }
  0x3e   :  { %776 = vmatpush3.msra.mxu1 %v149_v41  ;;  %742 = vmatprep.subr.mxu0 %v132_v42  ;;  %v559_v34 = vld [vmem:[%s1055_s3 + $0x60] sm:$0xff]  ;;  %v553_v40 = vld [vmem:[%s1055_s3 + $0x30] sm:$0xff]  ;;  %v552_v41 = vld [vmem:[%s1055_s3 + $0x28] sm:$0xff] }
  0x3f   :  { %777 = vmatprep.subr.mxu1 %v164_v43  ;;  %743 = vmatpush3.msra.mxu0 %v116_v44  ;;  %v555_v38 = vld [vmem:[%s1055_s3 + $0x40] sm:$0xff]  ;;  %v550_v43 = vld [vmem:[%s1055_s3 + $0x18] sm:$0xff]  ;;  %v549_v44 = vld [vmem:[%s1055_s3 + $0x10] sm:$0xff] }
  0x40   :  { %778 = vmatpush3.msra.mxu1 %v148_v45  ;;  %744 = vmatprep.subr.mxu0 %v131_v46  ;;  %v551_v42 = vld [vmem:[%s1055_s3 + $0x20] sm:$0xff]  ;;  %v548_v45 = vld [vmem:[%s1055_s3 + $0x8] sm:$0xff] }
  0x41   :  { %779 = vmatprep.subr.mxu1 %v163_v47  ;;  %745 = vmatpush3.msra.mxu0 %v115_v48  ;;  %v547_v46 = vld [vmem:[%s1055_s3] sm:$0xff] }
  0x42   :  { %780 = vmatpush3.msra.mxu1 %v147_v49  ;;  %746 = vmatprep.subr.mxu0 %v130_v50  ;;  %v659_v2 = vld [vmem:[%s1056_s4] ss:$0 sm:$0xff] }
  0x43   :  { %781 = vmatprep.subr.mxu1 %v162_v51  ;;  %747 = vmatpush3.msra.mxu0 %v114_v52  ;;  %v658_v51 = vld [vmem:[%s1054_s2] ss:$0 sm:$0xff] }
  0x44   :  { %782 = vmatpush3.msra.mxu1 %v146_v53  ;;  %748 = vmatprep.subr.mxu0 %v129_v54 }
  0x45   :  { %783 = vmatprep.subr.mxu1 %v161_v56  ;;  %749 = vmatpush3.msra.mxu0 %v113_v57 }
  0x46   :  { %784 = vmatpush3.msra.mxu1 %v145_v58  ;;  %750 = vmatprep.subr.mxu0 %v128_v59 }
  0x47   :  { %785 = vmatprep.subr.mxu1 %v160_v60  ;;  %751 = vmatpush3.msra.mxu0 %v112_v61 }
  0x48   :  { %786 = vmatpush3.msra.mxu1 %v144_v62  ;;  %752 = vmatprep.subr.mxu0 %v127_v63 }
  0x49   :  { %787 = vmatprep.subr.mxu1 %v159_v0  ;;  %753 = vmatpush3.msra.mxu0 %v111_v1 }
  0x4a   :  { %788 = vmatpush3.msra.mxu1 %v143_v4  ;;  %754 = vmatprep.subr.mxu0 %v126_v7 }
  0x4b   :  { %789 = vmatprep.subr.mxu1 %v158_v8  ;;  %755 = vmatpush3.msra.mxu0 %v110_v9 }
  0x4c   :  { %790 = vmatpush3.msra.mxu1 %v142_v10  ;;  %756 = vmatprep.subr.mxu0 %v125_v11 }
  0x4d   :  { %791 = vmatprep.subr.mxu1 %v157_v12  ;;  %757 = vmatpush3.msra.mxu0 %v109_v15 }
  0x4e   :  { %792 = vmatpush3.msra.mxu1 %v141_v16  ;;  %758 = vmatprep.subr.mxu0 %v124_v19 }
  0x4f   :  { %793 = vmatprep.subr.mxu1 %v156_v20  ;;  %759 = vmatpush3.msra.mxu0 %v108_v21 }
  0x50   :  { %794 = vmatpush3.msra.mxu1 %v140_v22  ;;  %760 = vmatprep.subr.mxu0 %v123_v23 }
  0x51   :  { %795 = vmatprep.subr.mxu1 %v155_v24  ;;  %761 = vmatpush3.msra.mxu0 %v107_v26 }
  0x52   :  { %470 = vmatprep.mubr.f32.mxu0 %v255_v25  ;;  %796 = vmatpush3.msra.mxu1 %v139_v55 }
  0x53   :  { %540 = vmatprep.mubr.f32.mxu1 %v257_v27  ;;  %471 = vmatmul.mubr.f32.vlgmr.msra.gmra.mxu0 %v254_v28 }
  0x54   :  { %541 = vmatmul.mubr.f32.vlgmr.msra.gmra.mxu1 %v256_v29  ;;  %817 = vmatprep.subr.mxu0 %v923_v31 }
  0x55   :  { %818 = vmatpush3.msra.mxu0 %v562_v30  ;;  %849 = vmatprep.mubr.msk.f32.mxu0 %vm924_vm0, %v923_v31 }
  0x56   :  { %819 = vmatprep.subr.mxu0 %v923_v31 }
  0x57   :  { %820 = vmatpush3.msra.mxu0 %v561_v32 }
  0x58   :  { %821 = vmatprep.subr.mxu0 %v923_v31 }
  0x59   :  { %822 = vmatpush3.msra.mxu0 %v560_v33 }
  0x5a   :  { %823 = vmatprep.subr.mxu0 %v923_v31 }
  0x5b   :  { %824 = vmatpush3.msra.mxu0 %v559_v34 }
  0x5c   :  { %825 = vmatprep.subr.mxu0 %v923_v31 }
  0x5d   :  { %826 = vmatpush3.msra.mxu0 %v558_v35 }
  0x5e   :  { %827 = vmatprep.subr.mxu0 %v923_v31 }
  0x5f   :  { %828 = vmatpush3.msra.mxu0 %v557_v36 }
  0x60   :  { %829 = vmatprep.subr.mxu0 %v923_v31 }
  0x61   :  { %830 = vmatpush3.msra.mxu0 %v556_v37 }
  0x62   :  { %831 = vmatprep.subr.mxu0 %v923_v31 }
  0x63   :  { %832 = vmatpush3.msra.mxu0 %v555_v38 }
  0x64   :  { %833 = vmatprep.subr.mxu0 %v923_v31 }
  0x65   :  { %834 = vmatpush3.msra.mxu0 %v554_v39 }
  0x66   :  { %835 = vmatprep.subr.mxu0 %v923_v31 }
  0x67   :  { %836 = vmatpush3.msra.mxu0 %v553_v40 }
  0x68   :  { %837 = vmatprep.subr.mxu0 %v923_v31 }
  0x69   :  { %838 = vmatpush3.msra.mxu0 %v552_v41 }
  0x6a   :  { %839 = vmatprep.subr.mxu0 %v923_v31 }
  0x6b   :  { %840 = vmatpush3.msra.mxu0 %v551_v42 }
  0x6c   :  { %841 = vmatprep.subr.mxu0 %v923_v31 }
  0x6d   :  { %842 = vmatpush3.msra.mxu0 %v550_v43 }
  0x6e   :  { %843 = vmatprep.subr.mxu0 %v923_v31 }
  0x6f   :  { %844 = vmatpush3.msra.mxu0 %v549_v44 }
  0x70   :  { %845 = vmatprep.subr.mxu0 %v923_v31 }
  0x71   :  { %846 = vmatpush3.msra.mxu0 %v548_v45 }
  0x72   :  { %847 = vmatprep.subr.mxu0 %v923_v31 }
  0x73   :  { %848 = vmatpush3.msra.mxu0 %v547_v46 }
  0xf1   :  { %v692_v47 = vpop.f32.mrf.mxu0 }
  0xf3   :  { %v727_v48 = vpop.f32.mrf.mxu1  ;;  %v693_v49 = vpop.f32.mrf.mxu0 }
  0xf4   :  { %v694_v50 = vadd.f32 %v693_v49, %v692_v47 }
  0xf5   :  { %v728_v52 = vpop.f32.mrf.mxu1 }
  0xf6   :  { %v333_v53 = vadd.f32 %v694_v50, %v658_v51  ;;  %v729_v54 = vadd.f32 %v728_v52, %v727_v48 }
  0xf8   :  { %v403_v60 = vadd.f32 %v729_v54, %v333_v53 }
 0x113   :  { %v762_v56 = vpop.f32.mrf.mxu0 }
 0x114   :  { %v797_v57 = vpop.f32.mrf.mxu1 }
 0x115   :  { %v763_v58 = vpop.f32.mrf.mxu0 }
 0x116   :  { %v798_v59 = vpop.f32.mrf.mxu1  ;;  %v764_v61 = vadd.f32 %v763_v58, %v762_v56 }
 0x117   :  { %v799_v63 = vadd.f32 %v798_v59, %v797_v57 }
 0x118   :  { %v473_v62 = vadd.f32 %v764_v61, %v403_v60 }
 0x11a   :  { %v543_v0 = vadd.f32 %v799_v63, %v473_v62 }
 0x11c   :  { %873 = vtanh.f32 %v543_v0 }
 0x129   :  { %v874_v1 = vpop.eup %873 }
 0x12a   :  { %850 = vmatmul.mubr.f32.vlgmr.msra.gmra.mxu0 %v874_v1 }
 0x1ea   :  { %v636_v3 = vpop.f32.mrf.mxu0 }
 0x1eb   :  { %v637_v4 = vadd.f32 %v659_v2, %v636_v3 }
 0x1ec   :  { %v851_v5 = vpop.f32.mrf.mxu0 }
 0x1ed   :  { %640 = vst [vmem:[#allocation5] sm:$0xff] %v637_v4 }
 0x1ee   :  { %645 = vsyncadd [#allocation4], 96  ;;  %s925_s2 = smov [#allocation5]  }
 0x1ef   :  { %s646_s22 = sshll.u32 %s925_s2, 4  ;;  %s647_s22 = int_to_ptr.vmem [resolvable:$true] %s646_s22 }
 0x1f0   :  { %s895_s23 = scalar_lea.vmem %s647_s22, 32  ;;  %s899_s24 = scalar_lea.vmem %s647_s22, 128 }
 0x1f1   :  { %p896_p5 = scmp.ne.s32.totalorder %s647_s22, %s895_s23  ;;  %p900_p6 = scmp.lt.s32.totalorder %s647_s22, %s647_s22 }
 0x1f2   :  { %p901_p7 = scmp.lt.s32.totalorder %s899_s24, %s895_s23 }
 0x1f4   :  { %p902_p8 = por %p901_p7, %p900_p6 }
 0x1f6   :  { %p903_p9 = pnand %p902_p8, %p896_p5 }
 0x1f8   :  { %906 = shalt.err (!%p903_p9)
}
 0x1f9   :  { %s926_s1 = smov 32   ;;  %s927_s25 = smov 2  }
 0x1fa   :  { %652 = dma.vmem_to_hbm [thread:$0]  %s647_s22, 32, %s1057_s5, [#allocation4], %s926_s1, %s926_s1, %s927_s25  }
 0x1fb   :  { %917 = dma.done.wait [#allocation4], 128  }
 0x1fc   :  { %918 = vsyncadd [#allocation4], 4294967168 }
 0x1fd   :  { %656 = vsyncpa [#allocation3], 1 }
 0x1fe   :  { %657 = vsyncpa [#allocation4], 1 }

</bundles_post_ra>
